<compile_context>
chip_gen: v6e
topology: v6e:2x2x1
jax: 0.10.0
libtpu: 0.0.40
codegen_flags: <defaults>
</compile_context>

<pallas_src>
import math

import jax
import jax.numpy as jnp
from jax.experimental import pallas as pl
from jax.experimental.pallas import tpu as pltpu

LANE_WIDTH = 512        # lane-dense last dim (multiple of 128)
MAX_BLOCK_ROWS = 1024   # 1024 x 512 x 4B = 2 MiB per f32 tile


def h_swish_kernel(x_ref, o_ref):
    x = x_ref[...]
    three = jnp.asarray(3.0, dtype=x.dtype)
    six = jnp.asarray(6.0, dtype=x.dtype)
    zero = jnp.asarray(0.0, dtype=x.dtype)
    gate = jnp.clip(x + three, zero, six) * jnp.asarray(1.0 / 6.0, dtype=x.dtype)
    o_ref[...] = x * gate


def h_swish(x):
    """Elementwise h_swish over a tensor of any shape."""
    orig_shape = x.shape
    n = x.size

    # Flatten and lay out lane-dense: (rows, LANE_WIDTH).
    rows = -(-n // LANE_WIDTH)
    if rows <= MAX_BLOCK_ROWS:
        block_rows = max(8, -(-rows // 8) * 8)     # single tile, rounded to sublane
    else:
        block_rows = MAX_BLOCK_ROWS
    rows_padded = -(-rows // block_rows) * block_rows
    n_padded = rows_padded * LANE_WIDTH

    x_flat = x.reshape(-1)
    if n_padded != n:
        x_flat = jnp.pad(x_flat, (0, n_padded - n))
    x2 = x_flat.reshape(rows_padded, LANE_WIDTH)

    grid = (rows_padded // block_rows,)

    out2 = pl.pallas_call(
        h_swish_kernel,
        out_shape=jax.ShapeDtypeStruct((rows_padded, LANE_WIDTH), x.dtype),
        grid=grid,
        in_specs=[pl.BlockSpec((block_rows, LANE_WIDTH), lambda i: (i, 0))],
        out_specs=pl.BlockSpec((block_rows, LANE_WIDTH), lambda i: (i, 0)),
        compiler_params=pltpu.CompilerParams(
            dimension_semantics=("parallel",),   # shard tiles across TCs (v7x)
            vmem_limit_bytes=32 << 20,
        ),
    )(x2)

    out_flat = out2.reshape(-1)[:n]
    return out_flat.reshape(orig_shape)


def h_swish_ref(x):
    # Pure-JAX reference matching PyTorch h_swish: x * relu6(x + 3) / 6.
    return x * (jnp.clip(x + 3.0, 0.0, 6.0) / 6.0)


if __name__ == "__main__":
    key = jax.random.PRNGKey(0)
    kx, ky = jax.random.split(key)

    # Small NCHW input consistent with typical use of h_swish as an activation.
    B, C, H, W = 2, 4, 16, 16
    x = jax.random.normal(kx, (B, C, H, W), dtype=jnp.float32) * 4.0

    out = h_swish(x)
    out = jax.block_until_ready(out)

    ref = h_swish_ref(x)
    assert out.shape == (B, C, H, W)
    assert jnp.allclose(out, ref, atol=1e-5, rtol=1e-5)

    # Ragged-size sanity check: exercises the padding path (size not a
    # multiple of LANE_WIDTH) to confirm padded lanes never corrupt outputs.
    x_odd = jax.random.normal(ky, (3, 5, 7, 9), dtype=jnp.float32) * 4.0
    out_odd = jax.block_until_ready(h_swish(x_odd))
    assert jnp.allclose(out_odd, h_swish_ref(x_odd), atol=1e-5, rtol=1e-5)

    print("KERNEL_OK")
</pallas_src>

<mosaic_0001>
module attributes {stable_mosaic.version = 11 : i64} {
  func.func @h_swish_kernel(%arg0: i32, %arg1: memref<8x512xf32, #tpu.memory_space<vmem>>, %arg2: memref<8x512xf32, #tpu.memory_space<vmem>>) attributes {dimension_semantics = [#tpu.dimension_semantics<parallel>], iteration_bounds = array<i64: 1>, scalar_prefetch = 0 : i64, scratch_operands = 0 : i64, tpu.core_type = #tpu.core_type<tc>, window_params = [{transform_indices = @transform_0, window_bounds = array<i64: 8, 512>}, {transform_indices = @transform_1, window_bounds = array<i64: 8, 512>}]} {
    %c0 = arith.constant 0 : index
    %c0_0 = arith.constant 0 : index
    %0 = vector.load %arg1[%c0, %c0_0] : memref<8x512xf32, #tpu.memory_space<vmem>>, vector<8x512xf32>
    %cst = arith.constant 3.000000e+00 : f32
    %1 = vector.broadcast %cst : f32 to vector<8x512xf32>
    %2 = arith.addf %0, %1 : vector<8x512xf32>
    %cst_1 = arith.constant 0.000000e+00 : f32
    %cst_2 = arith.constant 6.000000e+00 : f32
    %3 = vector.broadcast %cst_1 : f32 to vector<8x512xf32>
    %4 = arith.maximumf %3, %2 : vector<8x512xf32>
    %5 = vector.broadcast %cst_2 : f32 to vector<8x512xf32>
    %6 = arith.minimumf %5, %4 : vector<8x512xf32>
    %cst_3 = arith.constant 0.166666672 : f32
    %7 = vector.broadcast %cst_3 : f32 to vector<8x512xf32>
    %8 = arith.mulf %6, %7 : vector<8x512xf32>
    %9 = arith.mulf %0, %8 : vector<8x512xf32>
    %c0_4 = arith.constant 0 : index
    %c0_5 = arith.constant 0 : index
    %10 = vector.load %arg2[%c0_4, %c0_5] : memref<8x512xf32, #tpu.memory_space<vmem>>, vector<8x512xf32>
    tpu.vector_store %arg2[%c0_4, %c0_5], %9 {strides = array<i32>} : memref<8x512xf32, #tpu.memory_space<vmem>>, vector<8x512xf32>,
    return
  }
  func.func @transform_0(%arg0: i32) -> (i32, i32) {
    %c0_i32 = arith.constant 0 : i32
    %c0_i32_0 = arith.constant 0 : i32
    return %arg0, %c0_i32 : i32, i32
  }
  func.func @transform_1(%arg0: i32) -> (i32, i32) {
    %c0_i32 = arith.constant 0 : i32
    %c0_i32_0 = arith.constant 0 : i32
    return %arg0, %c0_i32 : i32, i32
  }
}

</mosaic_0001>

<bundles_post_ra>
// kernel: tpu_custom_call.1
= control target key start
LH: loop header
LB: loop body
LE: loop exit
PB: predicated region body
PF: predicated region fallthrough
CT: control target
= control target key end

     0   :  { %6 = vsyncpa [#allocation3], 0  ;;  %s128_s0 = inlined_call_operand.hbm [shape: f32[8,512], index: 0, kind: input, shape index: {}]   ;;  %s129_s1 = inlined_call_operand.hbm [shape: f32[8,512], index: 1, kind: output, shape index: {}]  }
   0x1   :  { %7 = vsyncpa [#allocation4], 0  ;;  %s110_s6 = smov [#allocation2]  }
   0x2   :  { %s14_s7 = sshll.u32 %s110_s6, 4  ;;  %s15_s7 = int_to_ptr.vmem [resolvable:$true] %s14_s7 }
   0x3   :  { %s74_s8 = scalar_lea.vmem %s15_s7, 512  ;;  %p79_p1 = scmp.lt.s32.totalorder %s15_s7, %s15_s7 }
   0x4   :  { %p75_p0 = scmp.ne.s32.totalorder %s15_s7, %s74_s8  ;;  %p80_p2 = scmp.lt.s32.totalorder %s74_s8, %s74_s8 }
   0x6   :  { %p81_p3 = por %p80_p2, %p79_p1 }
   0x8   :  { %p82_p4 = pnand %p81_p3, %p75_p0 }
   0xa   :  { %85 = shalt.err (!%p82_p4)
}
   0xb   :  { %17 = dma.hbm_to_vmem [thread:$0]  %s128_s0, 512, %s15_s7, [#allocation3]  }
   0xc   :  { %106 = dma.done.wait [#allocation3], 512  }
   0xd   :  { %107 = vsyncadd [#allocation3], 4294966784  ;;  %v21_v0 = vld [vmem:[#allocation2] sm:$0xff]  ;;  %v22_v1 = vld [vmem:[#allocation2 + $0x8] sm:$0xff]  ;;  %s111_s11 = smov [#allocation5]  }
   0xe   :  { %v23_v2 = vld [vmem:[#allocation2 + $0x10] sm:$0xff]  ;;  %v25_v3 = vadd.f32 3.0, %v21_v0  ;;  %v26_v4 = vadd.f32 3.0, %v22_v1  ;;  %v24_v6 = vld [vmem:[#allocation2 + $0x18] sm:$0xff]  ;;  %s55_s0 = sshll.u32 %s111_s11, 4  ;;  %s56_s0 = int_to_ptr.vmem [resolvable:$true] %s55_s0 }
   0xf   :  { %v27_v5 = vadd.f32 3.0, %v23_v2  ;;  %v28_v7 = vadd.f32 3.0, %v24_v6  ;;  %s86_s12 = scalar_lea.vmem %s56_s0, 512  ;;  %p91_p6 = scmp.lt.s32.totalorder %s56_s0, %s56_s0 }
  0x10   :  { %v29_v8 = vmax.f32 %v25_v3, 0.0  ;;  %v30_v9 = vmax.f32 %v26_v4, 0.0  ;;  %p87_p5 = scmp.ne.s32.totalorder %s56_s0, %s86_s12  ;;  %p92_p7 = scmp.lt.s32.totalorder %s86_s12, %s86_s12 }
  0x11   :  { %v31_v10 = vmax.f32 %v27_v5, 0.0  ;;  %v32_v11 = vmax.f32 %v28_v7, 0.0 }
  0x12   :  { %v33_v12 = vmin.f32 %v29_v8, 6.0  ;;  %v34_v13 = vmin.f32 %v30_v9, 6.0  ;;  %p93_p8 = por %p92_p7, %p91_p6 }
  0x13   :  { %v35_v14 = vmin.f32 %v31_v10, 6.0  ;;  %v36_v15 = vmin.f32 %v32_v11, 6.0 }
  0x14   :  { %v37_v16 = vmul.f32 0.16666667, %v33_v12  ;;  %v38_v17 = vmul.f32 0.16666667, %v34_v13  ;;  %p94_p9 = pnand %p93_p8, %p87_p5 }
  0x15   :  { %v39_v18 = vmul.f32 0.16666667, %v35_v14  ;;  %v40_v19 = vmul.f32 0.16666667, %v36_v15 }
  0x16   :  { %v41_v20 = vmul.f32 %v37_v16, %v21_v0  ;;  %v42_v21 = vmul.f32 %v38_v17, %v22_v1 }
  0x17   :  { %v43_v22 = vmul.f32 %v39_v18, %v23_v2  ;;  %v44_v23 = vmul.f32 %v40_v19, %v24_v6 }
  0x18   :  { %45 = vst [vmem:[#allocation5] sm:$0xff] %v41_v20  ;;  %46 = vst [vmem:[#allocation5 + $0x8] sm:$0xff] %v42_v21 }
  0x19   :  { %47 = vst [vmem:[#allocation5 + $0x10] sm:$0xff] %v43_v22  ;;  %48 = vst [vmem:[#allocation5 + $0x18] sm:$0xff] %v44_v23 }
  0x1a   :  { %97 = shalt.err (!%p94_p9)
}
  0x1b   :  { %58 = dma.vmem_to_hbm [thread:$0]  %s56_s0, 512, %s129_s1, [#allocation4]  }
  0x1c   :  { %108 = dma.done.wait [#allocation4], 512  }
  0x1d   :  { %109 = vsyncadd [#allocation4], 4294966784 }
  0x1e   :  { %62 = vsyncpa [#allocation3], 1 }
  0x1f   :  { %63 = vsyncpa [#allocation4], 1 }

</bundles_post_ra>
